<compile_context>
chip_gen: v7x
topology: tpu7x:2x2x1
jax: 0.10.0
libtpu: 0.0.40
codegen_flags: <defaults>
</compile_context>

<pallas_src>
import jax
import jax.numpy as jnp
from jax.experimental import pallas as pl
from jax.experimental.pallas import tpu as pltpu


# ---------------------------------------------------------------------------
# Kernels
# ---------------------------------------------------------------------------
def _kernel_with_option(h_ref,      # (TR, GE)  packed hidden rows
                        emb_ref,    # (1,  GE)  this batch's option embedding (tiled x G)
                        sel_ref,    # (GE, G)   block-diagonal termination weights (f32)
                        b_ref,      # (1,)      termination bias (SMEM scalar)
                        out_h_ref,  # (TR, GE)  augmented rows
                        out_p_ref): # (TR, G)   termination probs
    aug = h_ref[...] + emb_ref[...]                       # broadcast over rows
    out_h_ref[...] = aug.astype(out_h_ref.dtype)
    logits = jnp.dot(aug.astype(jnp.float32), sel_ref[...],
                     preferred_element_type=jnp.float32)  # MXU: (TR, GE) @ (GE, G)
    out_p_ref[...] = jax.nn.sigmoid(logits + b_ref[0])


def _kernel_no_option(h_ref, sel_ref, b_ref, out_h_ref, out_p_ref):
    h = h_ref[...]
    out_h_ref[...] = h.astype(out_h_ref.dtype)
    logits = jnp.dot(h.astype(jnp.float32), sel_ref[...],
                     preferred_element_type=jnp.float32)
    out_p_ref[...] = jax.nn.sigmoid(logits + b_ref[0])


# ---------------------------------------------------------------------------
# Wrapper
# ---------------------------------------------------------------------------
def _lane_packing(E):
    """Pick (E_pad, G) so that G * E_pad is a multiple of 128 (lane-dense rows)."""
    if E >= 128:
        E_pad = ((E + 127) // 128) * 128
        return E_pad, 1
    for d in (8, 16, 32, 64, 128):
        if d >= E:
            return d, 128 // d
    return 128, 1  # unreachable


def temporal_abstraction(hidden_states: jax.Array,
                         option_embedding: jax.Array,
                         term_w: jax.Array,
                         term_b: jax.Array,
                         current_option: jax.Array | None = None):
    """Pallas implementation of TemporalAbstraction.forward.

    hidden_states:    (B, S, E)
    option_embedding: (num_options, E)
    term_w:           (E,)   (nn.Linear(embed_dim, 1).weight.squeeze(0))
    term_b:           ()     (nn.Linear(embed_dim, 1).bias.squeeze(0))
    current_option:   (B,) int or None
    Returns (augmented_states (B, S, E), termination_probs (B, S)).
    """
    B, S, E = hidden_states.shape
    dtype = hidden_states.dtype
    itemsize = jnp.dtype(dtype).itemsize
    sublane = max(8, 32 // itemsize)          # 8 for f32, 16 for bf16, 32 for int8/fp8

    # ---- lane packing: fold G consecutive seq positions into the lane axis ----
    E_pad, G = _lane_packing(E)
    GE = G * E_pad                            # always a multiple of 128
    S_pad = ((S + G - 1) // G) * G
    R = S_pad // G                            # packed rows per batch element

    h = hidden_states
    if E_pad != E or S_pad != S:
        h = jnp.pad(h, ((0, 0), (0, S_pad - S), (0, E_pad - E)))
    h_pack = h.reshape(B, R, GE)

    # ---- row tile: sublane-dense, ~8 MiB VMEM footprint per grid step ----
    per_row_bytes = GE * (4 * itemsize + 4) + 8 * G   # dbl-buffered in/out + f32 temps
    budget = 8 * 1024 * 1024
    max_tile_rows = max(sublane, budget // per_row_bytes)
    if R <= max_tile_rows:
        TR = R
    else:
        TR = max(sublane, (max_tile_rows // sublane) * sublane)
    n_t = pl.cdiv(R, TR)
    # v7x megacore: guarantee enough grid steps for the two TensorCores to share.
    while B * n_t < 4 and TR > sublane:
        new_tr = max(sublane, ((TR // 2) // sublane) * sublane)
        if new_tr == TR:
            break
        TR = new_tr
        n_t = pl.cdiv(R, TR)

    # ---- termination head params ----
    w = term_w.astype(jnp.float32)
    if E_pad != E:
        w = jnp.pad(w, (0, E_pad - E))
    # Block-diagonal selection matrix: column g holds term_w in rows g*E_pad:(g+1)*E_pad,
    # so a single matmul produces all G per-position logits of a packed row.
    sel = (jnp.eye(G, dtype=jnp.float32)[:, None, :] * w[None, :, None]).reshape(GE, G)
    b_smem = term_b.reshape(1).astype(jnp.float32)

    # Batch outer, row tiles inner: emb/sel blocks are only re-DMA'd when b changes.
    grid = (B, n_t)
    h_spec = pl.BlockSpec((pl.Squeezed(), TR, GE), lambda b, t: (b, t, 0))
    sel_spec = pl.BlockSpec((GE, G), lambda b, t: (0, 0))
    b_spec = pl.BlockSpec(memory_space=pltpu.MemorySpace.SMEM)
    out_h_spec = pl.BlockSpec((pl.Squeezed(), TR, GE), lambda b, t: (b, t, 0))
    out_p_spec = pl.BlockSpec((pl.Squeezed(), TR, G), lambda b, t: (b, t, 0))

    out_shapes = (
        jax.ShapeDtypeStruct((B, R, GE), dtype),
        jax.ShapeDtypeStruct((B, R, G), jnp.float32),
    )
    compiler_params = pltpu.CompilerParams(
        dimension_semantics=("parallel", "parallel"),
        vmem_limit_bytes=48 * 1024 * 1024,
    )

    if current_option is not None:
        # Pre-gather option rows in plain XLA (tiny), tile across the packed lanes.
        emb = option_embedding[current_option.astype(jnp.int32)].astype(dtype)  # (B, E)
        if E_pad != E:
            emb = jnp.pad(emb, ((0, 0), (0, E_pad - E)))
        emb_pack = jnp.tile(emb, (1, G)).reshape(B, 1, GE)
        emb_spec = pl.BlockSpec((pl.Squeezed(), 1, GE), lambda b, t: (b, 0, 0))
        out_h, out_p = pl.pallas_call(
            _kernel_with_option,
            out_shape=out_shapes,
            grid=grid,
            in_specs=[h_spec, emb_spec, sel_spec, b_spec],
            out_specs=[out_h_spec, out_p_spec],
            compiler_params=compiler_params,
        )(h_pack, emb_pack, sel, b_smem)
    else:
        out_h, out_p = pl.pallas_call(
            _kernel_no_option,
            out_shape=out_shapes,
            grid=grid,
            in_specs=[h_spec, sel_spec, b_spec],
            out_specs=[out_h_spec, out_p_spec],
            compiler_params=compiler_params,
        )(h_pack, sel, b_smem)

    out_h = out_h.reshape(B, S_pad, E_pad)[:, :S, :E]
    out_p = out_p.reshape(B, S_pad)[:, :S]
    return out_h, out_p


# ---------------------------------------------------------------------------
# Reference & test
# ---------------------------------------------------------------------------
def _reference(hidden_states, option_embedding, term_w, term_b, current_option):
    """Pure-JAX reference mirroring the PyTorch forward."""
    h = hidden_states
    if current_option is not None:
        h = h + option_embedding[current_option][:, None, :]
    logits = jnp.sum(h * term_w, axis=-1) + term_b
    return h, jax.nn.sigmoid(logits)


if __name__ == "__main__":
    # Small shapes consistent with the module: batch=2, seq=8, embed=32, 4 options.
    B, S, E = 2, 8, 32
    num_options = 4
    option_duration = 5  # unused in forward

    key = jax.random.PRNGKey(0)
    k_h, k_emb, k_w, k_b, k_opt = jax.random.split(key, 5)

    hidden_states = jax.random.normal(k_h, (B, S, E), dtype=jnp.float32)
    option_embedding = jax.random.normal(k_emb, (num_options, E), dtype=jnp.float32)
    term_w = jax.random.normal(k_w, (E,), dtype=jnp.float32) * 0.1
    term_b = jax.random.normal(k_b, (), dtype=jnp.float32) * 0.1
    current_option = jax.random.randint(k_opt, (B,), 0, num_options, dtype=jnp.int32)

    # With option conditioning
    out_h, out_p = temporal_abstraction(
        hidden_states, option_embedding, term_w, term_b, current_option)
    out_h, out_p = jax.block_until_ready(out_h), jax.block_until_ready(out_p)
    ref_h, ref_p = _reference(hidden_states, option_embedding, term_w, term_b, current_option)
    assert jnp.allclose(out_h, ref_h, atol=1e-5, rtol=1e-5)
    assert jnp.allclose(out_p, ref_p, atol=2e-3, rtol=1e-2)

    # Without option conditioning (current_option=None path)
    out_h2, out_p2 = temporal_abstraction(
        hidden_states, option_embedding, term_w, term_b, None)
    out_h2, out_p2 = jax.block_until_ready(out_h2), jax.block_until_ready(out_p2)
    ref_h2, ref_p2 = _reference(hidden_states, option_embedding, term_w, term_b, None)
    assert jnp.allclose(out_h2, ref_h2, atol=1e-5, rtol=1e-5)
    assert jnp.allclose(out_p2, ref_p2, atol=2e-3, rtol=1e-2)

    print("KERNEL_OK")
</pallas_src>

<mosaic_0001>
module attributes {stable_mosaic.version = 11 : i64} {
  func.func @_kernel_with_option(%arg0: i32, %arg1: i32, %arg2: memref<1x2x128xf32, #tpu.memory_space<vmem>>, %arg3: memref<1x1x128xf32, #tpu.memory_space<vmem>>, %arg4: memref<128x4xf32, #tpu.memory_space<vmem>>, %arg5: memref<1xf32, #tpu.memory_space<smem>>, %arg6: memref<1x2x128xf32, #tpu.memory_space<vmem>>, %arg7: memref<1x2x4xf32, #tpu.memory_space<vmem>>) attributes {dimension_semantics = [#tpu.dimension_semantics<parallel>, #tpu.dimension_semantics<parallel>], iteration_bounds = array<i64: 2, 1>, scalar_prefetch = 0 : i64, scratch_operands = 0 : i64, tpu.core_type = #tpu.core_type<tc>, window_params = [{transform_indices = @transform_0, window_bounds = array<i64: 1, 2, 128>}, {transform_indices = @transform_1, window_bounds = array<i64: 1, 1, 128>}, {pipeline_mode = #tpu.pipeline_mode<synchronous>, transform_indices = @transform_2, window_bounds = array<i64: 128, 4>}, {transform_indices = @transform_3, window_bounds = array<i64: 1>}, {transform_indices = @transform_4, window_bounds = array<i64: 1, 2, 128>}, {transform_indices = @transform_5, window_bounds = array<i64: 1, 2, 4>}]} {
    %c0 = arith.constant 0 : index
    %c0_0 = arith.constant 0 : index
    %c0_1 = arith.constant 0 : index
    %0 = vector.load %arg2[%c0, %c0_0, %c0_1] : memref<1x2x128xf32, #tpu.memory_space<vmem>>, vector<1x2x128xf32>
    %1 = vector.shape_cast %0 : vector<1x2x128xf32> to vector<2x128xf32>
    %c0_2 = arith.constant 0 : index
    %c0_3 = arith.constant 0 : index
    %c0_4 = arith.constant 0 : index
    %2 = vector.load %arg3[%c0_2, %c0_3, %c0_4] : memref<1x1x128xf32, #tpu.memory_space<vmem>>, vector<1x1x128xf32>
    %3 = vector.shape_cast %2 : vector<1x1x128xf32> to vector<1x128xf32>
    %4 = vector.broadcast %3 : vector<1x128xf32> to vector<2x128xf32>
    %5 = arith.addf %1, %4 : vector<2x128xf32>
    %c0_5 = arith.constant 0 : index
    %c0_6 = arith.constant 0 : index
    %c0_7 = arith.constant 0 : index
    %6 = vector.load %arg6[%c0_5, %c0_6, %c0_7] : memref<1x2x128xf32, #tpu.memory_space<vmem>>, vector<1x2x128xf32>
    %7 = vector.shape_cast %6 : vector<1x2x128xf32> to vector<2x128xf32>
    %8 = vector.shape_cast %5 : vector<2x128xf32> to vector<1x2x128xf32>
    tpu.vector_store %arg6[%c0_5, %c0_6, %c0_7], %8 {strides = array<i32>} : memref<1x2x128xf32, #tpu.memory_space<vmem>>, vector<1x2x128xf32>,
    %c0_8 = arith.constant 0 : index
    %c0_9 = arith.constant 0 : index
    %9 = vector.load %arg4[%c0_8, %c0_9] : memref<128x4xf32, #tpu.memory_space<vmem>>, vector<128x4xf32>
    %cst = arith.constant dense<0.000000e+00> : vector<2x4xf32>
    %10 = tpu.matmul %5, %9, %cst {dimension_numbers = #tpu.dot_dimension_numbers<[1], [0], [0], [1], [0, 0, 1, 1], [], []>} : vector<2x128xf32>, vector<128x4xf32>, vector<2x4xf32> -> vector<2x4xf32>
    %c0_10 = arith.constant 0 : index
    %11 = memref.load %arg5[%c0_10] : memref<1xf32, #tpu.memory_space<smem>>
    %12 = vector.broadcast %11 : f32 to vector<2x4xf32>
    %13 = arith.addf %10, %12 : vector<2x4xf32>
    %14 = arith.negf %13 : vector<2x4xf32>
    %15 = math.exp %14 : vector<2x4xf32>
    %cst_11 = arith.constant 1.000000e+00 : f32
    %16 = vector.broadcast %cst_11 : f32 to vector<2x4xf32>
    %17 = arith.addf %16, %15 : vector<2x4xf32>
    %18 = arith.divf %16, %17 : vector<2x4xf32>
    %c0_12 = arith.constant 0 : index
    %c0_13 = arith.constant 0 : index
    %c0_14 = arith.constant 0 : index
    %19 = vector.load %arg7[%c0_12, %c0_13, %c0_14] : memref<1x2x4xf32, #tpu.memory_space<vmem>>, vector<1x2x4xf32>
    %20 = vector.shape_cast %19 : vector<1x2x4xf32> to vector<2x4xf32>
    %21 = vector.shape_cast %18 : vector<2x4xf32> to vector<1x2x4xf32>
    tpu.vector_store %arg7[%c0_12, %c0_13, %c0_14], %21 {strides = array<i32>} : memref<1x2x4xf32, #tpu.memory_space<vmem>>, vector<1x2x4xf32>,
    return
  }
  func.func @transform_0(%arg0: i32, %arg1: i32) -> (i32, i32, i32) {
    %c0_i32 = arith.constant 0 : i32
    %c0_i32_0 = arith.constant 0 : i32
    return %arg0, %arg1, %c0_i32 : i32, i32, i32
  }
  func.func @transform_1(%arg0: i32, %arg1: i32) -> (i32, i32, i32) {
    %c0_i32 = arith.constant 0 : i32
    %c0_i32_0 = arith.constant 0 : i32
    %c0_i32_1 = arith.constant 0 : i32
    return %arg0, %c0_i32, %c0_i32_0 : i32, i32, i32
  }
  func.func @transform_2(%arg0: i32, %arg1: i32) -> (i32, i32) {
    %c0_i32 = arith.constant 0 : i32
    %c0_i32_0 = arith.constant 0 : i32
    %c0_i32_1 = arith.constant 0 : i32
    return %c0_i32, %c0_i32_0 : i32, i32
  }
  func.func @transform_3(%arg0: i32, %arg1: i32) -> i32 {
    %c0_i32 = arith.constant 0 : i32
    %c0_i32_0 = arith.constant 0 : i32
    return %c0_i32 : i32
  }
  func.func @transform_4(%arg0: i32, %arg1: i32) -> (i32, i32, i32) {
    %c0_i32 = arith.constant 0 : i32
    %c0_i32_0 = arith.constant 0 : i32
    return %arg0, %arg1, %c0_i32 : i32, i32, i32
  }
  func.func @transform_5(%arg0: i32, %arg1: i32) -> (i32, i32, i32) {
    %c0_i32 = arith.constant 0 : i32
    %c0_i32_0 = arith.constant 0 : i32
    return %arg0, %arg1, %c0_i32 : i32, i32, i32
  }
}

</mosaic_0001>

<bundles_post_ra>
// kernel: tpu_custom_call.1
= control target key start
LH: loop header
LB: loop body
LE: loop exit
PB: predicated region body
PF: predicated region fallthrough
CT: control target
= control target key end

     0   :  { %s1033_s0 = inlined_call_operand.vmem [shape: f32[2,2,128], index: 0, kind: input, shape index: {}]   ;;  %s1034_s1 = inlined_call_operand.vmem [shape: f32[2,1,128], index: 1, kind: input, shape index: {}]   ;;  %s1035_s2 = inlined_call_operand.vmem [shape: f32[128,4], index: 2, kind: input, shape index: {}]   ;;  %s1036_s3 = inlined_call_operand.<no memory space> [shape: f32[1], index: 3, kind: input, shape index: {}]   ;;  %s1037_s4 = inlined_call_operand.hbm [shape: f32[2,2,128], index: 4, kind: output, shape index: {0}]   ;;  %s1038_s5 = inlined_call_operand.hbm [shape: f32[2,2,4], index: 5, kind: output, shape index: {1}]  }
   0x1   :  { %11 = sst [smem:[#allocation2]] %s1036_s3 }
   0x2   :  { %12 = vsyncpa [#allocation4], 0 }
   0x3   :  { %14 = vsyncpa [#allocation4 + $0x1], 0 }
   0x4   :  { %15 = vsyncpa [#allocation6], 0 }
   0x5   :  { %17 = vsyncpa [#allocation6 + $0x1], 0  ;;  %s835_s20 = smov 0   ;;  %s837_s21 = smov 0  }
   0x6   :  { %s839_s22 = smov 0   ;;  %s841_s23 = smov 0  }
   0x7   :  { %s843_s24 = smov 0   ;;  %s845_s25 = smov 0  }
   0x8 LB: > { %s526_s3 = sadd.s32 4294967295, %s795_s25   ;;  %s527_s26 = sadd.s32 4294967294, %s795_s25   ;;  %s795_s25 = sphi %s845_s25, %s23_s25   ;;  %s791_s24 = sphi %s843_s24, %s1045_s24   ;;  %s787_s23 = sphi %s841_s23, %s1044_s23   ;;  %s783_s22 = sphi %s839_s22, %s1043_s22   ;;  %s779_s21 = sphi %s837_s21, %s1042_s21   ;;  %s775_s20 = sphi %s835_s20, %s1041_s20  }
   0x9   : > { %s35_s27 = sadd.s32 1, %s791_s24  ;;  %s140_s28 = sadd.s32 1, %s783_s22 }
   0xa   : > { %p37_p0 = scmp.ge.s32.totalorder %s35_s27, 2  ;;  %p150_p1 = scmp.ne.s32.totalorder %s783_s22, %s779_s21 }
   0xb   : > { %p151_p2 = scmp.eq.s32.totalorder %s526_s3, 1  ;;  %p156_p3 = scmp.ne.s32.totalorder %s779_s21, %s775_s20 }
   0xc   : > { %s1047_s27 = smov (%p37_p0, %s35_s27), 0  ;;  %p157_p5 = scmp.eq.s32.totalorder %s527_s26, 1 }
   0xd   : > { %p875_p4 = por %p151_p2, %p150_p1  ;;  %s135_s30 = ssub.s32 %s791_s24, %s1047_s27 }
   0xe   : > { %p530_p6 = scmp.ge.s32.totalorder %s795_s25, 1  ;;  %p138_p7 = scmp.eq.s32.totalorder %s135_s30, 0 }
   0xf   : > { %p882_p8 = por %p157_p5, %p156_p3  ;;  %p225_p9 = scmp.lt.s32.totalorder %s795_s25, 3 }
  0x10   : > { %s888_s7 = scalar_select %p138_p7, %s783_s22, %s140_s28  }
  0x11   : > { %p226_p10 = pnand %p530_p6, %p225_p9 }
  0x12   : > { %v283_v0 = vld [vmem:[%s1035_s2] sm:$0xff] (!%p226_p10)  ;;  %v284_v1 = vld [vmem:[%s1035_s2 + $0x8] sm:$0xff] (!%p226_p10)  ;;  %v285_v2 = vld [vmem:[%s1035_s2 + $0x10] sm:$0xff] (!%p226_p10)  ;;  %v797_v3 = vmov (!%p226_p10), 0.0|0.0   ;;  %vm798_vm0 = vmmov (!%p226_p10), 0   ;;  %v799_v6 = vmov (!%p226_p10), 0.0  }
  0x13   : > { %229 = sbr.rel (%p226_p10) target bundleno = 306 (0x132), region = 36  ;;  %594 = vmatprep.subr.bf16.mxu0 (!%p226_p10), %v797_v3  ;;  %v595_v4 = vpack.c.bf16 (!%p226_p10), %v284_v1, %v283_v0  ;;  %v286_v5 = vld [vmem:[%s1035_s2 + $0x18] sm:$0xff] (!%p226_p10)  ;;  %591 = vmatprep.mubr.msk.f32.mxu0 (!%p226_p10), %vm798_vm0, %v799_v6  ;;  %v287_v8 = vld [vmem:[%s1035_s2 + $0x20] sm:$0xff] (!%p226_p10)  ;;  %v288_v9 = vld [vmem:[%s1035_s2 + $0x28] sm:$0xff] (!%p226_p10)  ;;  %p263_p11 = scmp.lt.s32.totalorder (!%p226_p10), %s787_s23, 1 }
  0x14   : > { %v598_v7 = vpack.c.bf16 (!%p226_p10), %v286_v5, %v285_v2  ;;  %v601_v10 = vpack.c.bf16 (!%p226_p10), %v288_v9, %v287_v8  ;;  %v289_v11 = vld [vmem:[%s1035_s2 + $0x30] sm:$0xff] (!%p226_p10)  ;;  %v290_v12 = vld [vmem:[%s1035_s2 + $0x38] sm:$0xff] (!%p226_p10)  ;;  %v291_v14 = vld [vmem:[%s1035_s2 + $0x40] sm:$0xff] (!%p226_p10)  ;;  %s947_s17 = sand.u32 (!%p226_p10), 1, %s779_s21   ;;  %s538_s18 = sshll.u32 (!%p226_p10), %s787_s23, 5 }
  0x15   : > { %596 = vmatpush3.bf16.msra.mxu0 (!%p226_p10), %v595_v4  ;;  %v604_v13 = vpack.c.bf16 (!%p226_p10), %v290_v12, %v289_v11  ;;  %v292_v15 = vld [vmem:[%s1035_s2 + $0x48] sm:$0xff] (!%p226_p10)  ;;  %v293_v17 = vld [vmem:[%s1035_s2 + $0x50] sm:$0xff] (!%p226_p10)  ;;  %v294_v18 = vld [vmem:[%s1035_s2 + $0x58] sm:$0xff] (!%p226_p10)  ;;  %s531_s19 = sshll.u32 (!%p226_p10), %s947_s17, 1  ;;  %s380_s8 = scalar_lea.sflag (!%p226_p10), [#allocation4], %s947_s17 }
  0x16   : > { %597 = vmatprep.subr.bf16.mxu0 (!%p226_p10), %v797_v3  ;;  %v607_v16 = vpack.c.bf16 (!%p226_p10), %v292_v15, %v291_v14  ;;  %v610_v19 = vpack.c.bf16 (!%p226_p10), %v294_v18, %v293_v17  ;;  %v295_v20 = vld [vmem:[%s1035_s2 + $0x60] sm:$0xff] (!%p226_p10)  ;;  %v296_v21 = vld [vmem:[%s1035_s2 + $0x68] sm:$0xff] (!%p226_p10)  ;;  %v297_v23 = vld [vmem:[%s1035_s2 + $0x70] sm:$0xff] (!%p226_p10)  ;;  %s255_s28 = scalar_lea.vmem (!%p226_p10), [#allocation3], %s531_s19  ;;  %s800_s10 = smov (!%p226_p10), [#allocation3]  }
  0x17   : > { %v613_v22 = vpack.c.bf16 (!%p226_p10), %v296_v21, %v295_v20  ;;  %v298_v24 = vld [vmem:[%s1035_s2 + $0x78] sm:$0xff] (!%p226_p10)  ;;  %s399_s30 = sshll.u32 (!%p226_p10), %s255_s28, 4  ;;  %s689_s11 = sshll.u32 (!%p226_p10), %s800_s10, 4  ;;  %s400_s30 = int_to_ptr.vmem [resolvable:$true] %s399_s30  ;;  %s690_s11 = int_to_ptr.vmem [resolvable:$false] %s689_s11 }
  0x18   : > { %v616_v25 = vpack.c.bf16 (!%p226_p10), %v298_v24, %v297_v23  ;;  %s685_s9 = scalar_lea.vmem (!%p226_p10), %s400_s30, 32  ;;  %p692_p1 = scmp.lt.s32.totalorder (!%p226_p10), %s400_s30, %s690_s11 }
  0x19   : > { %599 = vmatpush3.bf16.msra.mxu0 (!%p226_p10), %v598_v7  ;;  %p686_p12 = scmp.ne.s32.totalorder (!%p226_p10), %s400_s30, %s685_s9 }
  0x1a   : > { %600 = vmatprep.subr.bf16.mxu0 %v797_v3  ;;  %s264_s16 = scalar_select %p263_p11, %s787_s23, 1 }
  0x1b   : > { %p687_p13 = pnand %p686_p12, %p875_p4 }
  0x1c   : > { %s533_s26 = sshll.u32 %s264_s16, 1  ;;  %s272_s15 = scalar_lea.vmem %s1034_s1, %s264_s16 }
  0x1d   : > { %602 = vmatpush3.bf16.msra.mxu0 %v601_v10  ;;  %s269_s12 = scalar_lea.vmem %s1033_s0, %s533_s26  ;;  %v534_v27 = vld [vmem:[%s272_s15] ss:$0 sm:$0xff]  ;;  %s956_s16 = scalar_lea.hbm %s1037_s4, %s538_s18 }
  0x1e   : > { %603 = vmatprep.subr.bf16.mxu0 %v797_v3  ;;  %v273_v26 = vld [vmem:[%s269_s12] sm:$0x3]  ;;  %p688_p0 = pneg %p687_p13  ;;  %s691_s12 = scalar_lea.vmem %s690_s11, 64 }
  0x1f   : > { %v281_v28 = vadd.f32 %v534_v27, %v273_v26  ;;  %p693_p2 = scmp.lt.s32.totalorder %s691_s12, %s685_s9 }
  0x21   : > { %605 = vmatpush3.bf16.msra.mxu0 %v604_v13  ;;  %282 = vst [vmem:[%s255_s28] sm:$0x3] %v281_v28  ;;  %p694_p3 = por %p693_p2, %p692_p1 }
  0x22   : > { %606 = vmatprep.subr.bf16.mxu0 %v797_v3 }
  0x23   : > { %p695_p5 = pnand %p694_p3, %p688_p0 }
  0x25   : > { %608 = vmatpush3.bf16.msra.mxu0 %v607_v16 }
  0x26   : > { %609 = vmatprep.subr.bf16.mxu0 %v797_v3 }
  0x29   : > { %611 = vmatpush3.bf16.msra.mxu0 %v610_v19 }
  0x2a   : > { %612 = vmatprep.subr.bf16.mxu0 %v797_v3 }
  0x2d   : > { %614 = vmatpush3.bf16.msra.mxu0 %v613_v22 }
  0x2e   : > { %615 = vmatprep.subr.bf16.mxu0 %v797_v3 }
  0x31   : > { %617 = vmatpush3.bf16.msra.mxu0 %v616_v25 }
  0x34   : > { %592 = vmatmul.mubr.f32.vlgmr.msra.gmra.mrb[0].mxu0 %v281_v28 }
  0x35   : > { %698 = shalt.err (!%p695_p5)
}
  0x36   : > { %s699_s13 = scalar_lea.hbm %s956_s16, 32  ;;  %s703_s3 = scalar_lea.hbm %s1037_s4, 64 }
  0x37   : > { %p700_p6 = scmp.ne.s32.totalorder %s956_s16, %s699_s13  ;;  %p704_p10 = scmp.lt.u32.totalorder %s956_s16, %s1037_s4 }
  0x38   : > { %p705_p11 = scmp.lt.u32.totalorder %s703_s3, %s699_s13  ;;  %p707_p13 = scmp.lt.u32.totalorder %s699_s13, %s956_s16 }
  0x39   : > { %p701_p7 = pnand %p700_p6, %p875_p4 }
  0x3a   : > { %p706_p12 = por %p705_p11, %p704_p10 }
  0x3b   : > { %p702_p9 = pneg %p701_p7 }
  0x3c   : > { %p708_p0 = por %p707_p13, %p706_p12 }
  0x3e   : > { %p709_p1 = pnand %p708_p0, %p702_p9 }
  0x40   : > { %712 = shalt.err (!%p709_p1)
}
  0x41   : > { %618 = dma.vmem_to_hbm [thread:$0]  (%p875_p4), %s400_s30, 32, %s956_s16, %s380_s8   ;;  %vm377_vm1 = vcmask 25600  }
  0x42   : > { %s299_s9 = sld [smem:[#allocation2]]  ;;  %s262_s10 = scalar_lea.vmem [#allocation5], %s531_s19 }
  0x43   : > { %s413_s11 = sshll.u32 %s262_s10, 4  ;;  %s985_s16 = scalar_lea.hbm %s1038_s5, %s538_s18  ;;  %s987_s11 = int_to_ptr.vmem [resolvable:$true] %s413_s11 }
  0x44   : > { %s385_s30 = scalar_lea.sflag [#allocation6], %s947_s17  ;;  %s713_s8 = scalar_lea.vmem %s987_s11, 32 }
  0x45   : > { %p714_p2 = scmp.ne.s32.totalorder %s987_s11, %s713_s8  ;;  %s801_s19 = smov [#allocation5]  }
  0x46   : > { %s717_s23 = sshll.u32 %s801_s19, 4  ;;  %s718_s23 = int_to_ptr.vmem [resolvable:$false] %s717_s23 }
  0x47   : > { %p715_p3 = pnand %p714_p2, %p875_p4  ;;  %s719_s14 = scalar_lea.vmem %s718_s23, 64 }
  0x48   : > { %v300_v29 = vstv %s299_s9  ;;  %p720_p6 = scmp.lt.s32.totalorder %s987_s11, %s718_s23  ;;  %p721_p7 = scmp.lt.s32.totalorder %s719_s14, %s713_s8 }
  0x49   : > { %p716_p5 = pneg %p715_p3 }
  0x4a   : > { %p722_p9 = por %p721_p7, %p720_p6 }
  0x4c   : > { %p723_p10 = pnand %p722_p9, %p716_p5 }
 0x107   : > { %v367_v30 = vpop.f32.mrb[0].mxu0 }
 0x108   : > { %v368_v31 = vadd.f32 %v367_v30, %v300_v29  ;;  %v593_v32 = vpop.f32.mrb[1].mxu0 }
 0x10a   : > { %v535_v33 = vmul.f32 -1.442695, %v368_v31 }
 0x10c   : > { %681 = vpow2.f32 %v535_v33 }
 0x116   : > { %v682_v34 = vpop.eup %681 }
 0x117   : > { %v374_v35 = vadd.f32 1.0, %v682_v34 }
 0x119   : > { %683 = vrcp.f32 %v374_v35 }
 0x123   : > { %v684_v36 = vpop.eup %683 }
 0x124   : > { %378 = vst.msk [vmem:[%s262_s10] sm:$0x3] %vm377_vm1, %v684_v36 }
 0x125   : > { %726 = shalt.err (!%p723_p10)
}
 0x126   : > { %s727_s17 = scalar_lea.hbm %s985_s16, 32  ;;  %s731_s3 = scalar_lea.hbm %s1038_s5, 64 }
 0x127   : > { %p728_p11 = scmp.ne.s32.totalorder %s985_s16, %s727_s17  ;;  %p732_p0 = scmp.lt.u32.totalorder %s985_s16, %s1038_s5 }
 0x128   : > { %p733_p1 = scmp.lt.u32.totalorder %s731_s3, %s727_s17  ;;  %p735_p3 = scmp.lt.u32.totalorder %s727_s17, %s985_s16 }
 0x129   : > { %p729_p12 = pnand %p728_p11, %p875_p4 }
 0x12a   : > { %p734_p2 = por %p733_p1, %p732_p0 }
 0x12b   : > { %p730_p13 = pneg %p729_p12 }
 0x12c   : > { %p736_p5 = por %p735_p3, %p734_p2 }
 0x12e   : > { %p737_p6 = pnand %p736_p5, %p730_p13 }
 0x130   : > { %740 = shalt.err (!%p737_p6)
}
 0x131   : > { %619 = dma.vmem_to_hbm [thread:$0]  (%p875_p4), %s987_s11, 32, %s985_s16, %s385_s30  }
 0x132 PF: > { %p629_p7 = scmp.ge.s32.totalorder %s795_s25, 2  ;;  %s425_s9 = sand.u32 1, %s775_s20  }
 0x133   : > { %s426_s10 = scalar_lea.sflag [#allocation4], %s425_s9 }
 0x134   : > { %p623_p9 = pnand %p629_p7, %p882_p8 }
 0x136   : > { %766 = dma.done.wait (!%p623_p9), %s426_s10, 32  }
 0x137   : > { %768 = vsyncadd (!%p623_p9), %s426_s10, 4294967264  ;;  %s435_s12 = scalar_lea.sflag [#allocation6], %s425_s9 }
 0x138   : > { %770 = dma.done.wait (!%p623_p9), %s435_s12, 32  }
 0x139   : > { %772 = vsyncadd (!%p623_p9), %s435_s12, 4294967264  ;;  %s23_s25 = sadd.s32 1, %s795_s25   ;;  %s1041_s20 = smov %s779_s21 }
 0x13a   : > { %p20_p10 = scmp.ge.s32.totalorder %s23_s25, 4   ;;  %s1042_s21 = smov %s783_s22 }
 0x13b   : > { %s1043_s22 = smov %s888_s7  ;;  %s1044_s23 = smov %s791_s24 }
 0x13c   : > { %s1045_s24 = smov %s1047_s27  ;;  %22 = sbr.rel (!%p20_p10) target bundleno = 8 (0x8), region = 91 }
 0x143   :  { %440 = vsyncpa [#allocation4], 1 }
 0x144   :  { %442 = vsyncpa [#allocation4 + $0x1], 1 }
 0x145   :  { %443 = vsyncpa [#allocation6], 1 }
 0x146   :  { %445 = vsyncpa [#allocation6 + $0x1], 1 }

</bundles_post_ra>
